<compile_context>
chip_gen: v7x
topology: tpu7x:2x2x1
jax: 0.10.0
libtpu: 0.0.40
codegen_flags: <defaults>
</compile_context>

<pallas_src>
import functools

import jax
import jax.numpy as jnp
from jax.experimental import pallas as pl
from jax.experimental.pallas import tpu as pltpu

HIDDEN = 10       # true hidden width of the MLP
HIDDEN_PAD = 16   # padded to a multiple of the 8-row f32 sublane tile


def discriminator_kernel(x_ref, p_ref, o_ref):
    # x_ref: (1, TB)            batch-on-lanes input tile
    # p_ref: (HIDDEN_PAD, 4)    packed params: col0=w1, col1=b1, col2=w2, [0,3]=b2
    #                           (rows >= HIDDEN are zero, so they contribute 0)
    # o_ref: (1, TB)            batch-on-lanes output tile
    x = x_ref[...]                      # (1, TB)
    w1 = p_ref[:, 0:1]                  # (16, 1)
    b1 = p_ref[:, 1:2]                  # (16, 1)
    w2 = p_ref[:, 2:3]                  # (16, 1)
    b2 = p_ref[0:1, 3:4]                # (1, 1)

    # Layer 1: (B,1)@(1,10) is a K=1 outer product -> VPU broadcast mul-add.
    h = jnp.maximum(w1 * x + b1, 0.0)   # (16, TB); padded rows stay exactly 0

    # Layer 2: (B,10)@(10,1) is N=1 -> VPU mul + XLU cross-sublane reduce.
    out = jnp.sum(h * w2, axis=0, keepdims=True) + b2   # (1, TB)

    o_ref[...] = out.astype(o_ref.dtype)


def pack_params(w1, b1, w2, b2):
    """Pack PyTorch-layout params (w1:(10,1), b1:(10,), w2:(1,10), b2:(1,))
    into a single (16, 4) f32 array (hidden rows zero-padded to 16)."""
    p = jnp.zeros((HIDDEN_PAD, 4), jnp.float32)
    p = p.at[:HIDDEN, 0].set(jnp.reshape(w1, (HIDDEN,)).astype(jnp.float32))
    p = p.at[:HIDDEN, 1].set(jnp.reshape(b1, (HIDDEN,)).astype(jnp.float32))
    p = p.at[:HIDDEN, 2].set(jnp.reshape(w2, (HIDDEN,)).astype(jnp.float32))
    p = p.at[0, 3].set(jnp.reshape(b2, ()).astype(jnp.float32))
    return p


@functools.partial(jax.jit, static_argnames=("lane_tile",))
def discriminator_forward(x, params, *, lane_tile=512):
    """x: (B, 1) f32 (PyTorch layout). params: packed (16, 4). Returns (B, 1)."""
    B = x.shape[0]
    xt = jnp.reshape(x.astype(jnp.float32), (1, B))       # batch -> lanes
    n_tiles = pl.cdiv(B, lane_tile)
    b_pad = n_tiles * lane_tile
    if b_pad != B:                                         # ragged last tile
        xt = jnp.pad(xt, ((0, 0), (0, b_pad - B)))

    out = pl.pallas_call(
        discriminator_kernel,
        out_shape=jax.ShapeDtypeStruct((1, b_pad), jnp.float32),
        grid=(n_tiles,),
        in_specs=[
            # lane-dense batch tile, pipelined across the grid
            pl.BlockSpec((1, lane_tile), lambda i: (0, i)),
            # single packed parameter slab, resident across all grid steps
            pl.BlockSpec((HIDDEN_PAD, 4), lambda i: (0, 0)),
        ],
        out_specs=pl.BlockSpec((1, lane_tile), lambda i: (0, i)),
        compiler_params=pltpu.CompilerParams(
            dimension_semantics=("parallel",),   # lets v7x split batch over 2 TCs
        ),
    )(xt, params)

    return jnp.reshape(out[0, :B], (B, 1))


def init_params(key):
    """PyTorch default nn.Linear init: U(-1/sqrt(fan_in), 1/sqrt(fan_in)),
    in PyTorch weight layout ((out, in))."""
    k1, k2, k3, k4 = jax.random.split(key, 4)
    bound1 = 1.0  # fan_in = 1
    w1 = jax.random.uniform(k1, (HIDDEN, 1), jnp.float32, -bound1, bound1)
    b1 = jax.random.uniform(k2, (HIDDEN,), jnp.float32, -bound1, bound1)
    bound2 = 1.0 / jnp.sqrt(float(HIDDEN))
    w2 = jax.random.uniform(k3, (1, HIDDEN), jnp.float32, -bound2, bound2)
    b2 = jax.random.uniform(k4, (1,), jnp.float32, -bound2, bound2)
    return w1, b1, w2, b2


if __name__ == "__main__":
    key = jax.random.PRNGKey(0)
    k_params, k_x = jax.random.split(key)

    w1, b1, w2, b2 = init_params(k_params)
    params = pack_params(w1, b1, w2, b2)

    # Small-but-realistic GAN batch; not a multiple of the 512-lane tile, so it
    # exercises both the multi-step grid and the ragged-tail padding path.
    B = 1000
    x = jax.random.normal(k_x, (B, 1), jnp.float32)

    out = jax.block_until_ready(discriminator_forward(x, params, lane_tile=512))

    # Reference in plain JAX (identical math to the PyTorch forward).
    ref = jnp.maximum(x @ w1.T + b1[None, :], 0.0) @ w2.T + b2[None, :]
    assert out.shape == (B, 1)
    assert jnp.allclose(out, ref, atol=1e-5, rtol=1e-5), float(
        jnp.max(jnp.abs(out - ref))
    )

    print("KERNEL_OK")
</pallas_src>

<mosaic_0001>
module attributes {stable_mosaic.version = 11 : i64} {
  func.func @discriminator_kernel(%arg0: i32, %arg1: memref<1x512xf32, #tpu.memory_space<vmem>>, %arg2: memref<16x4xf32, #tpu.memory_space<vmem>>, %arg3: memref<1x512xf32, #tpu.memory_space<vmem>>) attributes {dimension_semantics = [#tpu.dimension_semantics<parallel>], iteration_bounds = array<i64: 2>, scalar_prefetch = 0 : i64, scratch_operands = 0 : i64, tpu.core_type = #tpu.core_type<tc>, window_params = [{transform_indices = @transform_0, window_bounds = array<i64: 1, 512>}, {pipeline_mode = #tpu.pipeline_mode<synchronous>, transform_indices = @transform_1, window_bounds = array<i64: 16, 4>}, {transform_indices = @transform_2, window_bounds = array<i64: 1, 512>}]} {
    %c0 = arith.constant 0 : index
    %c0_0 = arith.constant 0 : index
    %0 = vector.load %arg1[%c0, %c0_0] : memref<1x512xf32, #tpu.memory_space<vmem>>, vector<1x512xf32>
    %c0_1 = arith.constant 0 : index
    %c0_2 = arith.constant 0 : index
    %1 = vector.load %arg2[%c0_1, %c0_2] : memref<16x4xf32, #tpu.memory_space<vmem>>, vector<16x1xf32>
    %c0_3 = arith.constant 0 : index
    %c1 = arith.constant 1 : index
    %2 = vector.load %arg2[%c0_3, %c1] : memref<16x4xf32, #tpu.memory_space<vmem>>, vector<16x1xf32>
    %c0_4 = arith.constant 0 : index
    %c2 = arith.constant 2 : index
    %3 = vector.load %arg2[%c0_4, %c2] : memref<16x4xf32, #tpu.memory_space<vmem>>, vector<16x1xf32>
    %c0_5 = arith.constant 0 : index
    %c3 = arith.constant 3 : index
    %4 = vector.load %arg2[%c0_5, %c3] : memref<16x4xf32, #tpu.memory_space<vmem>>, vector<1x1xf32>
    %5 = vector.broadcast %1 : vector<16x1xf32> to vector<16x512xf32>
    %6 = vector.broadcast %0 : vector<1x512xf32> to vector<16x512xf32>
    %7 = arith.mulf %5, %6 : vector<16x512xf32>
    %8 = vector.broadcast %2 : vector<16x1xf32> to vector<16x512xf32>
    %9 = arith.addf %7, %8 : vector<16x512xf32>
    %cst = arith.constant 0.000000e+00 : f32
    %10 = vector.broadcast %cst : f32 to vector<16x512xf32>
    %11 = arith.maximumf %9, %10 : vector<16x512xf32>
    %12 = vector.broadcast %3 : vector<16x1xf32> to vector<16x512xf32>
    %13 = arith.mulf %11, %12 : vector<16x512xf32>
    %cst_6 = arith.constant dense<0.000000e+00> : vector<512xf32>
    %14 = vector.multi_reduction <add>, %13, %cst_6 [0] : vector<16x512xf32> to vector<512xf32>
    %15 = vector.shape_cast %14 : vector<512xf32> to vector<1x512xf32>
    %16 = vector.broadcast %4 : vector<1x1xf32> to vector<1x512xf32>
    %17 = arith.addf %15, %16 : vector<1x512xf32>
    %c0_7 = arith.constant 0 : index
    %c0_8 = arith.constant 0 : index
    %18 = vector.load %arg3[%c0_7, %c0_8] : memref<1x512xf32, #tpu.memory_space<vmem>>, vector<1x512xf32>
    tpu.vector_store %arg3[%c0_7, %c0_8], %17 {strides = array<i32>} : memref<1x512xf32, #tpu.memory_space<vmem>>, vector<1x512xf32>,
    return
  }
  func.func @transform_0(%arg0: i32) -> (i32, i32) {
    %c0_i32 = arith.constant 0 : i32
    %c0_i32_0 = arith.constant 0 : i32
    return %c0_i32, %arg0 : i32, i32
  }
  func.func @transform_1(%arg0: i32) -> (i32, i32) {
    %c0_i32 = arith.constant 0 : i32
    %c0_i32_0 = arith.constant 0 : i32
    %c0_i32_1 = arith.constant 0 : i32
    return %c0_i32, %c0_i32_0 : i32, i32
  }
  func.func @transform_2(%arg0: i32) -> (i32, i32) {
    %c0_i32 = arith.constant 0 : i32
    %c0_i32_0 = arith.constant 0 : i32
    return %c0_i32, %arg0 : i32, i32
  }
}

</mosaic_0001>

<bundles_post_ra>
// kernel: discriminator_forward.1
= control target key start
LH: loop header
LB: loop body
LE: loop exit
PB: predicated region body
PF: predicated region fallthrough
CT: control target
= control target key end

     0   :  { %s399_s9 = smov 0   ;;  %s438_s0 = inlined_call_operand.vmem [shape: f32[1,1024], index: 0, kind: input, shape index: {}]   ;;  %s439_s1 = inlined_call_operand.vmem [shape: f32[16,4], index: 1, kind: input, shape index: {}]   ;;  %s440_s2 = inlined_call_operand.vmem [shape: f32[1,1024], index: 2, kind: output, shape index: {}]  }
   0x1 LB: > { %s343_s10 = sadd.s32 4294967295, %s377_s9   ;;  %p347_p0 = scmp.ge.s32.totalorder %s377_s9, 1  ;;  %s377_s9 = sphi %s399_s9, %s12_s9  }
   0x2   : > { %p112_p1 = scmp.lt.s32.totalorder %s377_s9, 3 }
   0x4   : > { %p113_p2 = pnand %p347_p0, %p112_p1 }
   0x5   : > { %v143_v0 = vld [vmem:[%s439_s1] sm:$0xff] (!%p113_p2)  ;;  %v379_v1 = vmov (!%p113_p2), 1   ;;  %v380_v2 = vmov (!%p113_p2), 0   ;;  %v144_v3 = vld [vmem:[%s439_s1 + $0x8] sm:$0xff] (!%p113_p2)  ;;  %v381_v4 = vmov (!%p113_p2), 2   ;;  %v382_v6 = vmov (!%p113_p2), 3  }
   0x6   : > { %116 = sbr.rel (%p113_p2) target bundleno = 172 (0xac), region = 28  ;;  %366 = vset.pattern.permute.xlu1 (!%p113_p2), %v379_v1  ;;  %365 = vset.pattern.permute.xlu0 (!%p113_p2), %v380_v2  ;;  %v145_v5 = vld [vmem:[%s439_s1] sm:$0x1] (!%p113_p2)  ;;  %s348_s17 = sshll.u32 (!%p113_p2), %s343_s10, 2  ;;  %v157_v7 = vlaneseq (!%p113_p2) }
   0x7   : > { %186 = vperm.xlu1 (!%p113_p2), %366, %v143_v0   ;;  %148 = vperm.xlu0 (!%p113_p2), %365, %v143_v0   ;;  %p133_p3 = scmp.lt.s32.totalorder (!%p113_p2), %s348_s17, 7 }
   0x8   : > { %v419_v8 = vshrl.u32 (!%p113_p2), %v157_v7, 7  ;;  %vm293_vm0 = vcmp.lt.s32.totalorder (!%p113_p2), %v157_v7, 512 }
   0xa   : > { %v159_v9 = vsub.s32 (!%p113_p2), 0, %v419_v8  ;;  %v163_v10 = vsub.s32 (!%p113_p2), 1, %v419_v8  ;;  %v167_v11 = vsub.s32 (!%p113_p2), 2, %v419_v8  ;;  %v171_v12 = vsub.s32 (!%p113_p2), 3, %v419_v8 }
   0xb   : > { %190 = vperm.xlu1 (!%p113_p2), %366, %v144_v3   ;;  %153 = vperm.xlu0 (!%p113_p2), %365, %v144_v3  }
   0xd   : > { %s442_s17 = smov (!%p133_p3, %s348_s17), 7 }
   0xe   : > { %s135_s20 = scalar_lea.vmem %s438_s0, %s442_s17  ;;  %s140_s23 = scalar_lea.vmem %s440_s2, %s442_s17 }
   0xf   : > { %367 = vset.pattern.permute.xlu0 %v381_v4  ;;  %368 = vset.pattern.permute.xlu1 %v381_v4  ;;  %v142_v13 = vld [vmem:[%s135_s20] sm:$0xf]  ;;  %v383_v4 = vmov 1966171168  }
  0x10   : > { %210 = vperm.xlu0 %367, %v143_v0   ;;  %214 = vperm.xlu1 %368, %v144_v3   ;;  %v160_v14 = vrot.slane %v142_v13, %v159_v9  ;;  %v164_v15 = vrot.slane %v142_v13, %v163_v10  ;;  %v168_v16 = vrot.slane %v142_v13, %v167_v11 }
  0x11   : > { %v172_v17 = vrot.slane %v142_v13, %v171_v12 }
  0x14   : > { %369 = vset.pattern.permute.xlu1 %v382_v6  ;;  %370 = vset.pattern.permute.xlu0 %v382_v6 }
  0x15   : > { %255 = vperm.xlu1 %369, %v145_v5   ;;  %v269_v5 = vunpack.c.l.s4 %v383_v4 }
  0x86   : > { %v187_v18 = vpop.permute.xlu1 %186  ;;  %v149_v19 = vpop.permute.xlu0 %148 }
  0x87   : > { %v177_v20 = vmul.f32 %v160_v14, %v149_v19  ;;  %v178_v21 = vmul.f32 %v164_v15, %v149_v19  ;;  %v179_v22 = vmul.f32 %v168_v16, %v149_v19  ;;  %v180_v23 = vmul.f32 %v172_v17, %v149_v19 }
  0x89   : > { %v193_v25 = vadd.f32 %v187_v18, %v177_v20  ;;  %v194_v26 = vadd.f32 %v187_v18, %v178_v21  ;;  %v195_v27 = vadd.f32 %v187_v18, %v179_v22  ;;  %v196_v28 = vadd.f32 %v187_v18, %v180_v23 }
  0x8a   : > { %v154_v24 = vpop.permute.xlu0 %153  ;;  %v191_v29 = vpop.permute.xlu1 %190 }
  0x8b   : > { %v181_v30 = vmul.f32 %v160_v14, %v154_v24  ;;  %v182_v31 = vmul.f32 %v164_v15, %v154_v24  ;;  %v183_v32 = vmul.f32 %v168_v16, %v154_v24  ;;  %v184_v33 = vmul.f32 %v172_v17, %v154_v24 }
  0x8c   : > { %v201_v38 = vmax.f32 %v193_v25, 0.0  ;;  %v202_v39 = vmax.f32 %v194_v26, 0.0  ;;  %v203_v40 = vmax.f32 %v195_v27, 0.0  ;;  %v204_v41 = vmax.f32 %v196_v28, 0.0 }
  0x8d   : > { %v197_v34 = vadd.f32 %v191_v29, %v181_v30  ;;  %v198_v35 = vadd.f32 %v191_v29, %v182_v31  ;;  %v199_v36 = vadd.f32 %v191_v29, %v183_v32  ;;  %v200_v37 = vadd.f32 %v191_v29, %v184_v33 }
  0x8e   : > { %v270_v16 = vunpack.c.0.s8 %v269_v5 }
  0x8f   : > { %v211_v42 = vpop.permute.xlu0 %210  ;;  %v215_v43 = vpop.permute.xlu1 %214  ;;  %v205_v44 = vmax.f32 %v197_v34, 0.0  ;;  %v206_v45 = vmax.f32 %v198_v35, 0.0  ;;  %v207_v46 = vmax.f32 %v199_v36, 0.0  ;;  %v208_v47 = vmax.f32 %v200_v37, 0.0 }
  0x90   : > { %v217_v48 = vmul.f32 %v211_v42, %v201_v38  ;;  %v218_v49 = vmul.f32 %v211_v42, %v202_v39  ;;  %v219_v50 = vmul.f32 %v211_v42, %v203_v40  ;;  %v220_v51 = vmul.f32 %v211_v42, %v204_v41 }
  0x91   : > { %v221_v52 = vmul.f32 %v215_v43, %v205_v44  ;;  %v222_v53 = vmul.f32 %v215_v43, %v206_v45  ;;  %v223_v54 = vmul.f32 %v215_v43, %v207_v46  ;;  %v224_v55 = vmul.f32 %v215_v43, %v208_v47 }
  0x92   : > { %v273_v26 = vsub.s32 %v270_v16, %v419_v8 }
  0x93   : > { %v225_v56 = vadd.f32 %v221_v52, %v217_v48  ;;  %v232_v57 = vadd.f32 %v222_v53, %v218_v49  ;;  %v239_v58 = vadd.f32 %v223_v54, %v219_v50  ;;  %v246_v59 = vadd.f32 %v224_v55, %v220_v51 }
  0x94   : > { %v256_v21 = vpop.permute.xlu1 %255 }
  0x95   : > { %v226_v60 = vrot.slane %v225_v56, 4  ;;  %v233_v61 = vrot.slane %v232_v57, 4  ;;  %v240_v62 = vrot.slane %v239_v58, 4  ;;  %v247_v63 = vrot.slane %v246_v59, 4 }
  0x97   : > { %v227_v0 = vadd.f32 %v226_v60, %v225_v56  ;;  %v234_v1 = vadd.f32 %v233_v61, %v232_v57  ;;  %v241_v2 = vadd.f32 %v240_v62, %v239_v58  ;;  %v248_v3 = vadd.f32 %v247_v63, %v246_v59 }
  0x99   : > { %v228_v6 = vrot.slane %v227_v0, 2  ;;  %v235_v9 = vrot.slane %v234_v1, 2  ;;  %v242_v10 = vrot.slane %v241_v2, 2  ;;  %v249_v11 = vrot.slane %v248_v3, 2 }
  0x9b   : > { %v229_v12 = vadd.f32 %v228_v6, %v227_v0  ;;  %v236_v13 = vadd.f32 %v235_v9, %v234_v1  ;;  %v243_v14 = vadd.f32 %v242_v10, %v241_v2  ;;  %v250_v15 = vadd.f32 %v249_v11, %v248_v3 }
  0x9d   : > { %v230_v17 = vrot.slane %v229_v12, 1  ;;  %v237_v18 = vrot.slane %v236_v13, 1  ;;  %v244_v19 = vrot.slane %v243_v14, 1  ;;  %v251_v20 = vrot.slane %v250_v15, 1 }
  0x9f   : > { %v231_v22 = vadd.f32 %v230_v17, %v229_v12  ;;  %v238_v23 = vadd.f32 %v237_v18, %v236_v13  ;;  %v245_v24 = vadd.f32 %v244_v19, %v243_v14  ;;  %v252_v25 = vadd.f32 %v251_v20, %v250_v15 }
  0xa1   : > { %v258_v27 = vadd.f32 %v256_v21, %v231_v22  ;;  %v259_v28 = vadd.f32 %v256_v21, %v238_v23  ;;  %v260_v29 = vadd.f32 %v256_v21, %v245_v24  ;;  %v261_v30 = vadd.f32 %v256_v21, %v252_v25 }
  0xa3   : > { %v266_v31 = vcombine.low %v258_v27, %v259_v28  ;;  %v267_v32 = vcombine.low %v260_v29, %v261_v30 }
  0xa5   : > { %v274_v33 = vrot.slane %v266_v31, %v273_v26  ;;  %v281_v34 = vrot.slane %v267_v32, %v273_v26 }
  0xa7   : > { %v282_v35 = vcombine.low %v274_v33, %v281_v34 }
  0xa9   : > { %v289_v36 = vrot.slane %v282_v35, %v273_v26 }
  0xab   : > { %295 = vst.msk [vmem:[%s140_s23] sm:$0xf] %vm293_vm0, %v289_v36 }
  0xac PF: > { %s12_s9 = sadd.s32 1, %s377_s9  }
  0xad   : > { %p9_p4 = scmp.ge.s32.totalorder %s12_s9, 4  }
  0xaf   :  { %11 = sbr.rel (!%p9_p4) target bundleno = 1 (0x1), region = 58 }

</bundles_post_ra>
